<compile_context>
chip_gen: v7x
topology: tpu7x:2x2x1
jax: 0.10.0
libtpu: 0.0.40
codegen_flags: <defaults>
</compile_context>

<pallas_src>
import functools

import jax
import jax.numpy as jnp
from jax.experimental import pallas as pl
from jax.experimental.pallas import tpu as pltpu


def _round_up(v, m):
    return (v + m - 1) // m * m


def _choose_pack(layer_dims, max_pack=64):
    """Pick the point-packing factor that minimizes MXU push count.

    layer_dims: [(K, N_out), ...] per linear layer.
    Cost per point ~ sum_l ceil(pack*K_l/128) * ceil(pack*N_l/128) / pack.
    Ties break toward the larger pack (denser output lanes, fewer x loads).
    """
    best_pack, best_cost = 1, None
    for p in range(1, max_pack + 1):
        cost = sum((-(-(p * k) // 128)) * (-(-(p * n) // 128))
                   for k, n in layer_dims) / p
        if (best_cost is None or cost < best_cost - 1e-9
                or (abs(cost - best_cost) <= 1e-9 and p > best_pack)):
            best_pack, best_cost = p, cost
    return best_pack


def _liif_mlp_kernel(apply_sigmoid_scale, coord_win_max,
                     x_ref, w1_ref, b1_ref, w2_ref, b2_ref, w3_ref, b3_ref,
                     o_ref):
    # Hidden layer 1: Linear + ReLU  (lane-packed / block-diagonal weights)
    h = jnp.dot(x_ref[...], w1_ref[...], preferred_element_type=jnp.float32)
    h = jnp.maximum(h + b1_ref[...], 0.0)
    # Hidden layer 2: Linear + ReLU
    h = jnp.dot(h, w2_ref[...], preferred_element_type=jnp.float32)
    h = jnp.maximum(h + b2_ref[...], 0.0)
    # Output layer: Linear
    y = jnp.dot(h, w3_ref[...], preferred_element_type=jnp.float32)
    y = y + b3_ref[...]
    if apply_sigmoid_scale:
        # out_dim != 1 path: (sigmoid(y)*2 - 1) * coord_win_max
        #                  ==  tanh(y/2)       * coord_win_max   (single EUP op)
        y = jnp.tanh(0.5 * y) * jnp.float32(coord_win_max)
    o_ref[...] = y.astype(o_ref.dtype)


def liif_mlp_forward(x, params, coord_win_max, *, out_dim,
                     tile_rows=2048, pack=None):
    """LIIFMLP forward with a Pallas TPU kernel.

    x: (N, in_dim) float32 (any N; padded internally).
    params: dict with w1 (in,h1), b1 (1,h1), w2 (h1,h2), b2 (1,h2),
            w3 (h2,out_dim), b3 (1,out_dim)  -- y = x @ W + b convention.
    coord_win_max: Python float, baked into the kernel (used iff out_dim != 1).
    tile_rows: packed-row tile size (sweep 2048-8192 per generation; 2048 is a
               safe default for v5e's smaller scoped-VMEM budget).
    pack: #query points packed along the lane dim per row.  Default: chosen by
          _choose_pack to minimize MXU pushes (4 for in=16, hidden=32, out=3).
    """
    n, in_dim = x.shape
    h1 = params["w1"].shape[1]
    h2 = params["w2"].shape[1]

    if pack is None:
        pack = _choose_pack([(in_dim, h1), (h1, h2), (h2, out_dim)])

    # ---- lane-pack query points: (N, in_dim) -> (M, pack*in_dim) ----------
    n_pad = _round_up(n, pack)
    if n_pad != n:
        x = jnp.pad(x, ((0, n_pad - n), (0, 0)))
    m = n_pad // pack
    x_packed = x.reshape(m, pack * in_dim)

    # ---- block-diagonal weight copies (tiny one-time JAX op) --------------
    eye = jnp.eye(pack, dtype=jnp.float32)
    w1p = jnp.kron(eye, params["w1"])            # (pack*in, pack*h1)
    w2p = jnp.kron(eye, params["w2"])            # (pack*h1, pack*h2)
    w3p = jnp.kron(eye, params["w3"])            # (pack*h2, pack*out)
    b1p = jnp.tile(params["b1"], (1, pack))      # (1, pack*h1)
    b2p = jnp.tile(params["b2"], (1, pack))
    b3p = jnp.tile(params["b3"], (1, pack))
    out_packed = pack * out_dim

    # ---- row tiling (pad packed rows up to a tile multiple) ---------------
    tile = min(tile_rows, _round_up(m, 8))
    tile = _round_up(tile, 8)
    m_pad = _round_up(m, tile)
    if m_pad != m:
        x_packed = jnp.pad(x_packed, ((0, m_pad - m), (0, 0)))
    grid = m_pad // tile

    apply_sigmoid_scale = out_dim != 1
    kernel = functools.partial(_liif_mlp_kernel, apply_sigmoid_scale,
                               float(coord_win_max) if apply_sigmoid_scale
                               else 0.0)

    full2 = lambda r, c: pl.BlockSpec((r, c), lambda i: (0, 0))

    out_packed_arr = pl.pallas_call(
        kernel,
        out_shape=jax.ShapeDtypeStruct((m_pad, out_packed), jnp.float32),
        grid_spec=pltpu.PrefetchScalarGridSpec(
            num_scalar_prefetch=0,
            grid=(grid,),
            in_specs=[
                pl.BlockSpec((tile, pack * in_dim), lambda i: (i, 0)),
                full2(pack * in_dim, pack * h1),
                full2(1, pack * h1),
                full2(pack * h1, pack * h2),
                full2(1, pack * h2),
                full2(pack * h2, out_packed),
                full2(1, out_packed),
            ],
            out_specs=pl.BlockSpec((tile, out_packed), lambda i: (i, 0)),
        ),
        compiler_params=pltpu.CompilerParams(
            dimension_semantics=("parallel",),
            vmem_limit_bytes=32 << 20),
    )(x_packed, w1p, b1p, w2p, b2p, w3p, b3p)

    # ---- unpack: (m_pad, pack*out_dim) -> (N, out_dim) ---------------------
    out = out_packed_arr.reshape(m_pad * pack, out_dim)
    return out[:n]


def _init_params(key, in_dim, hidden_list, out_dim):
    """Deterministic synthetic init (shapes match the nn.Linear chain)."""
    params = {}
    dims = [in_dim] + list(hidden_list) + [out_dim]
    names = ["1", "2", "3"]
    for name, (din, dout) in zip(names, zip(dims[:-1], dims[1:])):
        key, kw, kb = jax.random.split(key, 3)
        scale = 1.0 / jnp.sqrt(jnp.float32(din))
        params[f"w{name}"] = jax.random.uniform(
            kw, (din, dout), jnp.float32, -scale, scale)
        params[f"b{name}"] = jax.random.uniform(
            kb, (1, dout), jnp.float32, -scale, scale)
    return params


def _reference(x, params, coord_win_max, out_dim):
    h = jnp.maximum(x @ params["w1"] + params["b1"], 0.0)
    h = jnp.maximum(h @ params["w2"] + params["b2"], 0.0)
    y = h @ params["w3"] + params["b3"]
    if out_dim != 1:
        y = jax.nn.sigmoid(y)
        y = (y * 2.0 - 1.0) * coord_win_max
    return y


if __name__ == "__main__":
    # Small LIIF-like shapes; N deliberately NOT a multiple of pack/tile.
    N, IN_DIM = 300, 16
    HIDDEN_LIST = [32, 32]
    COORD_WIN_MAX = 0.5

    key = jax.random.PRNGKey(0)
    key, kx = jax.random.split(key)
    x = jax.random.normal(kx, (N, IN_DIM), dtype=jnp.float32)

    # out_dim != 1 path (sigmoid + coord_win_max scaling)
    OUT_DIM = 3
    params = _init_params(key, IN_DIM, HIDDEN_LIST, OUT_DIM)
    out = liif_mlp_forward(x, params, COORD_WIN_MAX, out_dim=OUT_DIM)
    out = jax.block_until_ready(out)
    ref = _reference(x, params, COORD_WIN_MAX, OUT_DIM)
    assert out.shape == (N, OUT_DIM)
    assert jnp.allclose(out, ref, atol=1e-5, rtol=1e-5)

    # out_dim == 1 path (no sigmoid, no scaling)
    key, k2 = jax.random.split(key)
    params1 = _init_params(k2, IN_DIM, HIDDEN_LIST, 1)
    out1 = liif_mlp_forward(x, params1, None, out_dim=1)
    out1 = jax.block_until_ready(out1)
    ref1 = _reference(x, params1, None, 1)
    assert out1.shape == (N, 1)
    assert jnp.allclose(out1, ref1, atol=1e-5, rtol=1e-5)

    print("KERNEL_OK")
</pallas_src>

<mosaic_0001>
module attributes {stable_mosaic.version = 11 : i64} {
  func.func @_liif_mlp_kernel(%arg0: i32, %arg1: memref<80x64xf32, #tpu.memory_space<vmem>>, %arg2: memref<64x128xf32, #tpu.memory_space<vmem>>, %arg3: memref<1x128xf32, #tpu.memory_space<vmem>>, %arg4: memref<128x128xf32, #tpu.memory_space<vmem>>, %arg5: memref<1x128xf32, #tpu.memory_space<vmem>>, %arg6: memref<128x12xf32, #tpu.memory_space<vmem>>, %arg7: memref<1x12xf32, #tpu.memory_space<vmem>>, %arg8: memref<80x12xf32, #tpu.memory_space<vmem>>) attributes {dimension_semantics = [#tpu.dimension_semantics<parallel>], iteration_bounds = array<i64: 1>, scalar_prefetch = 0 : i64, scratch_operands = 0 : i64, tpu.core_type = #tpu.core_type<tc>, window_params = [{transform_indices = @transform_0, window_bounds = array<i64: 80, 64>}, {pipeline_mode = #tpu.pipeline_mode<synchronous>, transform_indices = @transform_1, window_bounds = array<i64: 64, 128>}, {pipeline_mode = #tpu.pipeline_mode<synchronous>, transform_indices = @transform_2, window_bounds = array<i64: 1, 128>}, {pipeline_mode = #tpu.pipeline_mode<synchronous>, transform_indices = @transform_3, window_bounds = array<i64: 128, 128>}, {pipeline_mode = #tpu.pipeline_mode<synchronous>, transform_indices = @transform_4, window_bounds = array<i64: 1, 128>}, {pipeline_mode = #tpu.pipeline_mode<synchronous>, transform_indices = @transform_5, window_bounds = array<i64: 128, 12>}, {pipeline_mode = #tpu.pipeline_mode<synchronous>, transform_indices = @transform_6, window_bounds = array<i64: 1, 12>}, {transform_indices = @transform_7, window_bounds = array<i64: 80, 12>}]} {
    %c0 = arith.constant 0 : index
    %c0_0 = arith.constant 0 : index
    %0 = vector.load %arg1[%c0, %c0_0] : memref<80x64xf32, #tpu.memory_space<vmem>>, vector<80x64xf32>
    %c0_1 = arith.constant 0 : index
    %c0_2 = arith.constant 0 : index
    %1 = vector.load %arg2[%c0_1, %c0_2] : memref<64x128xf32, #tpu.memory_space<vmem>>, vector<64x128xf32>
    %cst = arith.constant dense<0.000000e+00> : vector<80x128xf32>
    %2 = tpu.matmul %0, %1, %cst {dimension_numbers = #tpu.dot_dimension_numbers<[1], [0], [0], [1], [0, 0, 1, 1], [], []>} : vector<80x64xf32>, vector<64x128xf32>, vector<80x128xf32> -> vector<80x128xf32>
    %c0_3 = arith.constant 0 : index
    %c0_4 = arith.constant 0 : index
    %3 = vector.load %arg3[%c0_3, %c0_4] : memref<1x128xf32, #tpu.memory_space<vmem>>, vector<1x128xf32>
    %4 = vector.broadcast %3 : vector<1x128xf32> to vector<80x128xf32>
    %5 = arith.addf %2, %4 : vector<80x128xf32>
    %cst_5 = arith.constant 0.000000e+00 : f32
    %6 = vector.broadcast %cst_5 : f32 to vector<80x128xf32>
    %7 = arith.maximumf %5, %6 : vector<80x128xf32>
    %c0_6 = arith.constant 0 : index
    %c0_7 = arith.constant 0 : index
    %8 = vector.load %arg4[%c0_6, %c0_7] : memref<128x128xf32, #tpu.memory_space<vmem>>, vector<128x128xf32>
    %cst_8 = arith.constant dense<0.000000e+00> : vector<80x128xf32>
    %9 = tpu.matmul %7, %8, %cst_8 {dimension_numbers = #tpu.dot_dimension_numbers<[1], [0], [0], [1], [0, 0, 1, 1], [], []>} : vector<80x128xf32>, vector<128x128xf32>, vector<80x128xf32> -> vector<80x128xf32>
    %c0_9 = arith.constant 0 : index
    %c0_10 = arith.constant 0 : index
    %10 = vector.load %arg5[%c0_9, %c0_10] : memref<1x128xf32, #tpu.memory_space<vmem>>, vector<1x128xf32>
    %11 = vector.broadcast %10 : vector<1x128xf32> to vector<80x128xf32>
    %12 = arith.addf %9, %11 : vector<80x128xf32>
    %cst_11 = arith.constant 0.000000e+00 : f32
    %13 = vector.broadcast %cst_11 : f32 to vector<80x128xf32>
    %14 = arith.maximumf %12, %13 : vector<80x128xf32>
    %c0_12 = arith.constant 0 : index
    %c0_13 = arith.constant 0 : index
    %15 = vector.load %arg6[%c0_12, %c0_13] : memref<128x12xf32, #tpu.memory_space<vmem>>, vector<128x12xf32>
    %cst_14 = arith.constant dense<0.000000e+00> : vector<80x12xf32>
    %16 = tpu.matmul %14, %15, %cst_14 {dimension_numbers = #tpu.dot_dimension_numbers<[1], [0], [0], [1], [0, 0, 1, 1], [], []>} : vector<80x128xf32>, vector<128x12xf32>, vector<80x12xf32> -> vector<80x12xf32>
    %c0_15 = arith.constant 0 : index
    %c0_16 = arith.constant 0 : index
    %17 = vector.load %arg7[%c0_15, %c0_16] : memref<1x12xf32, #tpu.memory_space<vmem>>, vector<1x12xf32>
    %18 = vector.broadcast %17 : vector<1x12xf32> to vector<80x12xf32>
    %19 = arith.addf %16, %18 : vector<80x12xf32>
    %cst_17 = arith.constant 5.000000e-01 : f32
    %20 = vector.broadcast %cst_17 : f32 to vector<80x12xf32>
    %21 = arith.mulf %20, %19 : vector<80x12xf32>
    %22 = math.tanh %21 : vector<80x12xf32>
    %cst_18 = arith.constant 5.000000e-01 : f32
    %23 = vector.broadcast %cst_18 : f32 to vector<80x12xf32>
    %24 = arith.mulf %22, %23 : vector<80x12xf32>
    %c0_19 = arith.constant 0 : index
    %c0_20 = arith.constant 0 : index
    %25 = vector.load %arg8[%c0_19, %c0_20] : memref<80x12xf32, #tpu.memory_space<vmem>>, vector<80x12xf32>
    tpu.vector_store %arg8[%c0_19, %c0_20], %24 {strides = array<i32>} : memref<80x12xf32, #tpu.memory_space<vmem>>, vector<80x12xf32>,
    return
  }
  func.func @transform_0(%arg0: i32) -> (i32, i32) {
    %c0_i32 = arith.constant 0 : i32
    %c0_i32_0 = arith.constant 0 : i32
    return %arg0, %c0_i32 : i32, i32
  }
  func.func @transform_1(%arg0: i32) -> (i32, i32) {
    %c0_i32 = arith.constant 0 : i32
    %c0_i32_0 = arith.constant 0 : i32
    %c0_i32_1 = arith.constant 0 : i32
    return %c0_i32, %c0_i32_0 : i32, i32
  }
  func.func @transform_2(%arg0: i32) -> (i32, i32) {
    %c0_i32 = arith.constant 0 : i32
    %c0_i32_0 = arith.constant 0 : i32
    %c0_i32_1 = arith.constant 0 : i32
    return %c0_i32, %c0_i32_0 : i32, i32
  }
  func.func @transform_3(%arg0: i32) -> (i32, i32) {
    %c0_i32 = arith.constant 0 : i32
    %c0_i32_0 = arith.constant 0 : i32
    %c0_i32_1 = arith.constant 0 : i32
    return %c0_i32, %c0_i32_0 : i32, i32
  }
  func.func @transform_4(%arg0: i32) -> (i32, i32) {
    %c0_i32 = arith.constant 0 : i32
    %c0_i32_0 = arith.constant 0 : i32
    %c0_i32_1 = arith.constant 0 : i32
    return %c0_i32, %c0_i32_0 : i32, i32
  }
  func.func @transform_5(%arg0: i32) -> (i32, i32) {
    %c0_i32 = arith.constant 0 : i32
    %c0_i32_0 = arith.constant 0 : i32
    %c0_i32_1 = arith.constant 0 : i32
    return %c0_i32, %c0_i32_0 : i32, i32
  }
  func.func @transform_6(%arg0: i32) -> (i32, i32) {
    %c0_i32 = arith.constant 0 : i32
    %c0_i32_0 = arith.constant 0 : i32
    %c0_i32_1 = arith.constant 0 : i32
    return %c0_i32, %c0_i32_0 : i32, i32
  }
  func.func @transform_7(%arg0: i32) -> (i32, i32) {
    %c0_i32 = arith.constant 0 : i32
    %c0_i32_0 = arith.constant 0 : i32
    return %arg0, %c0_i32 : i32, i32
  }
}

</mosaic_0001>

<bundles_post_ra>
// kernel: tpu_custom_call.1
= control target key start
LH: loop header
LB: loop body
LE: loop exit
PB: predicated region body
PF: predicated region fallthrough
CT: control target
= control target key end

     0   :  { %vm51_vm0 = vcmask 523264   ;;  %vm523_vm1 = vcmask 97280   ;;  %s1095_s1 = inlined_call_operand.vmem [shape: f32[64,128], index: 1, kind: input, shape index: {}]   ;;  %s1096_s0 = inlined_call_operand.vmem [shape: f32[80,64], index: 0, kind: input, shape index: {}]   ;;  %s1097_s3 = inlined_call_operand.vmem [shape: f32[128,128], index: 3, kind: input, shape index: {}]   ;;  %s1098_s5 = inlined_call_operand.vmem [shape: f32[128,12], index: 5, kind: input, shape index: {}]   ;;  %s1099_s2 = inlined_call_operand.vmem [shape: f32[1,128], index: 2, kind: input, shape index: {}]   ;;  %s1100_s4 = inlined_call_operand.vmem [shape: f32[1,128], index: 4, kind: input, shape index: {}]   ;;  %s1101_s6 = inlined_call_operand.vmem [shape: f32[1,12], index: 6, kind: input, shape index: {}]   ;;  %s1102_s7 = inlined_call_operand.vmem [shape: f32[80,12], index: 7, kind: output, shape index: {}]  }
   0x1   :  { %v36_v0 = vld [vmem:[%s1095_s1] sm:$0xff]  ;;  %v37_v1 = vld [vmem:[%s1095_s1 + $0x8] sm:$0xff]  ;;  %v38_v2 = vld [vmem:[%s1095_s1 + $0x10] sm:$0xff] }
   0x2   :  { %v746_v3 = vpack.c.bf16 %v37_v1, %v36_v0  ;;  %v39_v4 = vld [vmem:[%s1095_s1 + $0x18] sm:$0xff]  ;;  %v40_v6 = vld [vmem:[%s1095_s1 + $0x20] sm:$0xff]  ;;  %v41_v7 = vld [vmem:[%s1095_s1 + $0x28] sm:$0xff] }
   0x3   :  { %v750_v5 = vpack.c.bf16 %v39_v4, %v38_v2  ;;  %v26_v8 = vld [vmem:[%s1096_s0] sm:$0xff]  ;;  %v754_v9 = vpack.c.bf16 %v41_v7, %v40_v6  ;;  %v42_v10 = vld [vmem:[%s1095_s1 + $0x30] sm:$0xff]  ;;  %v43_v11 = vld [vmem:[%s1095_s1 + $0x38] sm:$0xff] }
   0x4   :  { %747 = vmatprep.subr.bf16.mxu0 %v746_v3  ;;  %637 = vmatprep.mubr.msk.f32.mxu0 %vm51_vm0, %v26_v8  ;;  %v207_v12 = vld [vmem:[%s1097_s3] sm:$0xff]  ;;  %v208_v13 = vld [vmem:[%s1097_s3 + $0x8] sm:$0xff]  ;;  %v209_v14 = vld [vmem:[%s1097_s3 + $0x10] sm:$0xff]  ;;  %v758_v20 = vpack.c.bf16 %v43_v11, %v42_v10 }
   0x5   :  { %749 = vmatpush3.bf16.msra.mxu0 %v746_v3  ;;  %v762_v15 = vpack.c.bf16 %v208_v13, %v207_v12  ;;  %v210_v16 = vld [vmem:[%s1097_s3 + $0x18] sm:$0xff]  ;;  %v211_v18 = vld [vmem:[%s1097_s3 + $0x20] sm:$0xff]  ;;  %v212_v19 = vld [vmem:[%s1097_s3 + $0x28] sm:$0xff] }
   0x6   :  { %751 = vmatprep.subr.bf16.mxu0 %v750_v5  ;;  %v766_v17 = vpack.c.bf16 %v210_v16, %v209_v14  ;;  %v770_v21 = vpack.c.bf16 %v212_v19, %v211_v18  ;;  %v213_v22 = vld [vmem:[%s1097_s3 + $0x30] sm:$0xff]  ;;  %v214_v23 = vld [vmem:[%s1097_s3 + $0x38] sm:$0xff]  ;;  %v27_v25 = vld [vmem:[%s1096_s0 + $0x8] sm:$0xff] }
   0x7   :  { %763 = vmatprep.subr.bf16.mxu1 %v762_v15  ;;  %v774_v24 = vpack.c.bf16 %v214_v23, %v213_v22  ;;  %v215_v26 = vld [vmem:[%s1097_s3 + $0x40] sm:$0xff]  ;;  %v216_v27 = vld [vmem:[%s1097_s3 + $0x48] sm:$0xff]  ;;  %v28_v28 = vld [vmem:[%s1096_s0 + $0x10] sm:$0xff] }
   0x8   :  { %765 = vmatpush3.bf16.msra.mxu1 %v762_v15  ;;  %v778_v29 = vpack.c.bf16 %v216_v27, %v215_v26  ;;  %v29_v30 = vld [vmem:[%s1096_s0 + $0x18] sm:$0xff]  ;;  %v217_v31 = vld [vmem:[%s1097_s3 + $0x50] sm:$0xff]  ;;  %v30_v33 = vld [vmem:[%s1096_s0 + $0x20] sm:$0xff] }
   0x9   :  { %753 = vmatpush3.bf16.msra.mxu0 %v750_v5  ;;  %767 = vmatprep.subr.bf16.mxu1 %v766_v17  ;;  %v218_v32 = vld [vmem:[%s1097_s3 + $0x58] sm:$0xff]  ;;  %v31_v35 = vld [vmem:[%s1096_s0 + $0x28] sm:$0xff]  ;;  %v219_v36 = vld [vmem:[%s1097_s3 + $0x60] sm:$0xff] }
   0xa   :  { %755 = vmatprep.subr.bf16.mxu0 %v754_v9  ;;  %v782_v34 = vpack.c.bf16 %v218_v32, %v217_v31  ;;  %v220_v37 = vld [vmem:[%s1097_s3 + $0x68] sm:$0xff]  ;;  %v32_v38 = vld [vmem:[%s1096_s0 + $0x30] sm:$0xff]  ;;  %v33_v40 = vld [vmem:[%s1096_s0 + $0x38] sm:$0xff] }
   0xb   :  { %v786_v39 = vpack.c.bf16 %v220_v37, %v219_v36  ;;  %v34_v41 = vld [vmem:[%s1096_s0 + $0x40] sm:$0xff]  ;;  %v35_v42 = vld [vmem:[%s1096_s0 + $0x48] sm:$0xff]  ;;  %v221_v43 = vld [vmem:[%s1097_s3 + $0x70] sm:$0xff] }
   0xc   :  { %769 = vmatpush3.bf16.msra.mxu1 %v766_v17  ;;  %v222_v44 = vld [vmem:[%s1097_s3 + $0x78] sm:$0xff]  ;;  %v355_v46 = vld [vmem:[%s1098_s5] sm:$0xff]  ;;  %v356_v47 = vld [vmem:[%s1098_s5 + $0x8] sm:$0xff] }
   0xd   :  { %757 = vmatpush3.bf16.msra.mxu0 %v754_v9  ;;  %771 = vmatprep.subr.bf16.mxu1 %v770_v21  ;;  %v790_v45 = vpack.c.bf16 %v222_v44, %v221_v43  ;;  %v357_v48 = vld [vmem:[%s1098_s5 + $0x10] sm:$0xff]  ;;  %v794_v49 = vpack.c.bf16 %v356_v47, %v355_v46  ;;  %v358_v50 = vld [vmem:[%s1098_s5 + $0x18] sm:$0xff]  ;;  %v359_v52 = vld [vmem:[%s1098_s5 + $0x20] sm:$0xff] }
   0xe   :  { %759 = vmatprep.subr.bf16.mxu0 %v758_v20  ;;  %v798_v51 = vpack.c.bf16 %v358_v50, %v357_v48  ;;  %v360_v53 = vld [vmem:[%s1098_s5 + $0x28] sm:$0xff]  ;;  %v361_v55 = vld [vmem:[%s1098_s5 + $0x30] sm:$0xff]  ;;  %v362_v56 = vld [vmem:[%s1098_s5 + $0x38] sm:$0xff] }
   0xf   :  { %v802_v54 = vpack.c.bf16 %v360_v53, %v359_v52  ;;  %v806_v57 = vpack.c.bf16 %v362_v56, %v361_v55  ;;  %v363_v58 = vld [vmem:[%s1098_s5 + $0x40] sm:$0xff]  ;;  %v364_v59 = vld [vmem:[%s1098_s5 + $0x48] sm:$0xff]  ;;  %v365_v61 = vld [vmem:[%s1098_s5 + $0x50] sm:$0xff] }
  0x10   :  { %773 = vmatpush3.bf16.msra.mxu1 %v770_v21  ;;  %v810_v60 = vpack.c.bf16 %v364_v59, %v363_v58  ;;  %v366_v62 = vld [vmem:[%s1098_s5 + $0x58] sm:$0xff]  ;;  %v367_v0 = vld [vmem:[%s1098_s5 + $0x60] sm:$0xff]  ;;  %v368_v1 = vld [vmem:[%s1098_s5 + $0x68] sm:$0xff] }
  0x11   :  { %761 = vmatpush3.bf16.msra.mxu0 %v758_v20  ;;  %775 = vmatprep.subr.bf16.mxu1 %v774_v24  ;;  %v814_v63 = vpack.c.bf16 %v366_v62, %v365_v61  ;;  %v818_v2 = vpack.c.bf16 %v368_v1, %v367_v0  ;;  %v538_v3 = vld [vmem:[%s1099_s2] ss:$0 sm:$0xff] }
  0x12   :  { %795 = vmatprep.subr.bf16.mxu0 %v794_v49  ;;  %v549_v37 = vld [vmem:[%s1100_s4] ss:$0 sm:$0xff] }
  0x14   :  { %638 = vmatmul.mubr.msk.f32.vlgmr.msra.gmra.mrb[0].mxu0 %vm51_vm0, %v27_v25  ;;  %777 = vmatpush3.bf16.msra.mxu1 %v774_v24 }
  0x15   :  { %640 = vmatprep.mubr.msk.f32.mxu0 %vm51_vm0, %v28_v28  ;;  %779 = vmatprep.subr.bf16.mxu1 %v778_v29 }
  0x16   :  { %797 = vmatpush3.bf16.msra.mxu0 %v794_v49 }
  0x17   :  { %799 = vmatprep.subr.bf16.mxu0 %v798_v51 }
  0x18   :  { %641 = vmatmul.mubr.msk.f32.gmra.mrb[2].mxu0 %vm51_vm0, %v29_v30  ;;  %781 = vmatpush3.bf16.msra.mxu1 %v778_v29 }
  0x19   :  { %643 = vmatprep.mubr.msk.f32.mxu0 %vm51_vm0, %v30_v33  ;;  %783 = vmatprep.subr.bf16.mxu1 %v782_v34 }
  0x1a   :  { %801 = vmatpush3.bf16.msra.mxu0 %v798_v51 }
  0x1b   :  { %803 = vmatprep.subr.bf16.mxu0 %v802_v54 }
  0x1c   :  { %644 = vmatmul.mubr.msk.f32.gmra.mrb[4].mxu0 %vm51_vm0, %v31_v35  ;;  %785 = vmatpush3.bf16.msra.mxu1 %v782_v34  ;;  %v369_v34 = vld [vmem:[%s1098_s5 + $0x70] sm:$0xff]  ;;  %v370_v35 = vld [vmem:[%s1098_s5 + $0x78] sm:$0xff] }
  0x1d   :  { %646 = vmatprep.mubr.msk.f32.mxu0 %vm51_vm0, %v32_v38  ;;  %787 = vmatprep.subr.bf16.mxu1 %v786_v39  ;;  %v822_v36 = vpack.c.bf16 %v370_v35, %v369_v34 }
  0x1e   :  { %805 = vmatpush3.bf16.msra.mxu0 %v802_v54 }
  0x1f   :  { %807 = vmatprep.subr.bf16.mxu0 %v806_v57 }
  0x20   :  { %647 = vmatmul.mubr.msk.f32.gmra.mrb[6].mxu0 %vm51_vm0, %v33_v40  ;;  %789 = vmatpush3.bf16.msra.mxu1 %v786_v39 }
  0x21   :  { %649 = vmatprep.mubr.msk.f32.mxu0 %vm51_vm0, %v34_v41  ;;  %791 = vmatprep.subr.bf16.mxu1 %v790_v45 }
  0x22   :  { %809 = vmatpush3.bf16.msra.mxu0 %v806_v57 }
  0x23   :  { %811 = vmatprep.subr.bf16.mxu0 %v810_v60 }
  0x24   :  { %650 = vmatmul.mubr.msk.f32.gmra.mrb[8].mxu0 %vm51_vm0, %v35_v42  ;;  %793 = vmatpush3.bf16.msra.mxu1 %v790_v45 }
  0x26   :  { %813 = vmatpush3.bf16.msra.mxu0 %v810_v60 }
  0x27   :  { %815 = vmatprep.subr.bf16.mxu0 %v814_v63 }
  0x2a   :  { %817 = vmatpush3.bf16.msra.mxu0 %v814_v63 }
  0x2b   :  { %819 = vmatprep.subr.bf16.mxu0 %v818_v2 }
  0x2e   :  { %821 = vmatpush3.bf16.msra.mxu0 %v818_v2 }
  0x2f   :  { %823 = vmatprep.subr.bf16.mxu0 %v822_v36 }
  0x32   :  { %825 = vmatpush3.bf16.msra.mxu0 %v822_v36 }
  0xe7   :  { %v639_v4 = vpop.f32.mrb[0].mxu0 }
  0xe8   :  { %v154_v5 = vadd.f32 %v639_v4, %v538_v3  ;;  %v148_v6 = vpop.f32.mrb[1].mxu0  ;;  %v550_v4 = vld [vmem:[%s1101_s6] ss:$0 sm:$0xff] }
  0xe9   :  { %v149_v7 = vadd.f32 %v538_v3, %v148_v6 }
  0xea   :  { %v198_v10 = vmax.f32 %v154_v5, 0.0 }
  0xeb   :  { %v642_v8 = vpop.f32.mrb[2].mxu0  ;;  %v197_v9 = vmax.f32 %v149_v7, 0.0 }
  0xec   :  { %v164_v11 = vadd.f32 %v642_v8, %v538_v3  ;;  %v158_v12 = vpop.f32.mrb[3].mxu0 }
  0xed   :  { %v159_v13 = vadd.f32 %v538_v3, %v158_v12  ;;  %684 = vmatprep.mubr.f32.mxu1 %v197_v9 }
  0xee   :  { %685 = vmatmul.mubr.f32.vlgmr.msra.gmra.mrb[0].mxu1 %v198_v10  ;;  %v200_v16 = vmax.f32 %v164_v11, 0.0 }
  0xef   :  { %v199_v14 = vmax.f32 %v159_v13, 0.0  ;;  %v645_v15 = vpop.f32.mrb[4].mxu0 }
  0xf0   :  { %v174_v17 = vadd.f32 %v645_v15, %v538_v3  ;;  %v168_v18 = vpop.f32.mrb[5].mxu0 }
  0xf1   :  { %v169_v19 = vadd.f32 %v538_v3, %v168_v18  ;;  %687 = vmatprep.mubr.f32.mxu1 %v199_v14 }
  0xf2   :  { %688 = vmatmul.mubr.f32.gmra.mrb[2].mxu1 %v200_v16  ;;  %v202_v22 = vmax.f32 %v174_v17, 0.0 }
  0xf3   :  { %v201_v20 = vmax.f32 %v169_v19, 0.0  ;;  %v648_v21 = vpop.f32.mrb[6].mxu0 }
  0xf4   :  { %v184_v23 = vadd.f32 %v648_v21, %v538_v3  ;;  %v178_v24 = vpop.f32.mrb[7].mxu0 }
  0xf5   :  { %v179_v25 = vadd.f32 %v538_v3, %v178_v24  ;;  %690 = vmatprep.mubr.f32.mxu1 %v201_v20 }
  0xf6   :  { %691 = vmatmul.mubr.f32.gmra.mrb[4].mxu1 %v202_v22  ;;  %v204_v28 = vmax.f32 %v184_v23, 0.0 }
  0xf7   :  { %v203_v26 = vmax.f32 %v179_v25, 0.0  ;;  %v651_v27 = vpop.f32.mrb[8].mxu0 }
  0xf8   :  { %v194_v29 = vadd.f32 %v651_v27, %v538_v3  ;;  %v188_v30 = vpop.f32.mrb[9].mxu0 }
  0xf9   :  { %v189_v31 = vadd.f32 %v538_v3, %v188_v30  ;;  %693 = vmatprep.mubr.f32.mxu1 %v203_v26 }
  0xfa   :  { %694 = vmatmul.mubr.f32.gmra.mrb[6].mxu1 %v204_v28  ;;  %v206_v33 = vmax.f32 %v194_v29, 0.0 }
  0xfb   :  { %v205_v32 = vmax.f32 %v189_v31, 0.0 }
  0xfd   :  { %696 = vmatprep.mubr.f32.mxu1 %v205_v32 }
  0xfe   :  { %697 = vmatmul.mubr.f32.gmra.mrb[8].mxu1 %v206_v33 }
 0x1c1   :  { %v686_v38 = vpop.f32.mrb[0].mxu1 }
 0x1c2   :  { %v302_v39 = vadd.f32 %v686_v38, %v549_v37  ;;  %v296_v40 = vpop.f32.mrb[1].mxu1 }
 0x1c3   :  { %v297_v41 = vadd.f32 %v549_v37, %v296_v40 }
 0x1c4   :  { %v346_v44 = vmax.f32 %v302_v39, 0.0 }
 0x1c5   :  { %v345_v42 = vmax.f32 %v297_v41, 0.0  ;;  %v689_v43 = vpop.f32.mrb[2].mxu1 }
 0x1c6   :  { %v312_v45 = vadd.f32 %v689_v43, %v549_v37  ;;  %v306_v46 = vpop.f32.mrb[3].mxu1 }
 0x1c7   :  { %v307_v47 = vadd.f32 %v549_v37, %v306_v46  ;;  %731 = vmatprep.mubr.f32.mxu0 %v345_v42 }
 0x1c8   :  { %732 = vmatmul.mubr.f32.vlgmr.msra.gmra.mrb[10].mxu0 %v346_v44  ;;  %v348_v50 = vmax.f32 %v312_v45, 0.0 }
 0x1c9   :  { %v347_v48 = vmax.f32 %v307_v47, 0.0  ;;  %v692_v49 = vpop.f32.mrb[4].mxu1 }
 0x1ca   :  { %v322_v51 = vadd.f32 %v692_v49, %v549_v37  ;;  %v316_v52 = vpop.f32.mrb[5].mxu1 }
 0x1cb   :  { %v317_v53 = vadd.f32 %v549_v37, %v316_v52  ;;  %734 = vmatprep.mubr.f32.mxu0 %v347_v48 }
 0x1cc   :  { %735 = vmatmul.mubr.f32.gmra.mrb[12].mxu0 %v348_v50  ;;  %v350_v56 = vmax.f32 %v322_v51, 0.0 }
 0x1cd   :  { %v349_v54 = vmax.f32 %v317_v53, 0.0  ;;  %v695_v55 = vpop.f32.mrb[6].mxu1 }
 0x1ce   :  { %v332_v57 = vadd.f32 %v695_v55, %v549_v37  ;;  %v326_v58 = vpop.f32.mrb[7].mxu1 }
 0x1cf   :  { %v327_v59 = vadd.f32 %v549_v37, %v326_v58  ;;  %737 = vmatprep.mubr.f32.mxu0 %v349_v54 }
 0x1d0   :  { %738 = vmatmul.mubr.f32.gmra.mrb[14].mxu0 %v350_v56  ;;  %v352_v62 = vmax.f32 %v332_v57, 0.0 }
 0x1d1   :  { %v351_v60 = vmax.f32 %v327_v59, 0.0  ;;  %v698_v61 = vpop.f32.mrb[8].mxu1 }
 0x1d2   :  { %v342_v63 = vadd.f32 %v698_v61, %v549_v37  ;;  %v336_v0 = vpop.f32.mrb[9].mxu1 }
 0x1d3   :  { %v337_v1 = vadd.f32 %v549_v37, %v336_v0  ;;  %740 = vmatprep.mubr.f32.mxu0 %v351_v60 }
 0x1d4   :  { %741 = vmatmul.mubr.f32.gmra.mrb[16].mxu0 %v352_v62  ;;  %v354_v3 = vmax.f32 %v342_v63, 0.0 }
 0x1d5   :  { %v353_v2 = vmax.f32 %v337_v1, 0.0 }
 0x1d7   :  { %743 = vmatprep.mubr.f32.mxu0 %v353_v2 }
 0x1d8   :  { %744 = vmatmul.mubr.f32.gmra.mrb[18].mxu0 %v354_v3 }
 0x29b   :  { %v733_v5 = vpop.f32.mrb[10].mxu0 }
 0x29c   :  { %v450_v6 = vadd.f32 %v733_v5, %v550_v4  ;;  %v444_v7 = vpop.f32.mrb[11].mxu0 }
 0x29d   :  { %v445_v8 = vadd.f32 %v550_v4, %v444_v7 }
 0x29e   :  { %v494_v9 = vmul.f32 0.5, %v450_v6 }
 0x29f   :  { %v493_v10 = vmul.f32 0.5, %v445_v8  ;;  %v736_v11 = vpop.f32.mrb[12].mxu0 }
 0x2a0   :  { %826 = vtanh.f32 %v494_v9  ;;  %v460_v12 = vadd.f32 %v736_v11, %v550_v4  ;;  %v454_v13 = vpop.f32.mrb[13].mxu0 }
 0x2a1   :  { %828 = vtanh.f32 %v493_v10  ;;  %v455_v14 = vadd.f32 %v550_v4, %v454_v13 }
 0x2a2   :  { %v496_v15 = vmul.f32 0.5, %v460_v12 }
 0x2a3   :  { %v495_v16 = vmul.f32 0.5, %v455_v14  ;;  %v739_v17 = vpop.f32.mrb[14].mxu0 }
 0x2a4   :  { %830 = vtanh.f32 %v496_v15  ;;  %v470_v18 = vadd.f32 %v739_v17, %v550_v4  ;;  %v464_v19 = vpop.f32.mrb[15].mxu0 }
 0x2a5   :  { %832 = vtanh.f32 %v495_v16  ;;  %v465_v20 = vadd.f32 %v550_v4, %v464_v19 }
 0x2a6   :  { %v498_v21 = vmul.f32 0.5, %v470_v18 }
 0x2a7   :  { %v497_v22 = vmul.f32 0.5, %v465_v20  ;;  %v742_v23 = vpop.f32.mrb[16].mxu0 }
 0x2a8   :  { %834 = vtanh.f32 %v498_v21  ;;  %v480_v24 = vadd.f32 %v742_v23, %v550_v4  ;;  %v474_v25 = vpop.f32.mrb[17].mxu0 }
 0x2a9   :  { %836 = vtanh.f32 %v497_v22  ;;  %v475_v26 = vadd.f32 %v550_v4, %v474_v25 }
 0x2aa   :  { %v827_v27 = vpop.eup %826  ;;  %v500_v28 = vmul.f32 0.5, %v480_v24 }
 0x2ab   :  { %v829_v29 = vpop.eup %828  ;;  %v514_v30 = vmul.f32 0.5, %v827_v27  ;;  %v499_v31 = vmul.f32 0.5, %v475_v26  ;;  %v745_v32 = vpop.f32.mrb[18].mxu0 }
 0x2ac   :  { %v513_v33 = vmul.f32 0.5, %v829_v29  ;;  %838 = vtanh.f32 %v500_v28  ;;  %v490_v34 = vadd.f32 %v745_v32, %v550_v4  ;;  %v484_v35 = vpop.f32.mrb[19].mxu0 }
 0x2ad   :  { %525 = vst.msk [vmem:[%s1102_s7 + $0x8] sm:$0xff] %vm523_vm1, %v514_v30  ;;  %840 = vtanh.f32 %v499_v31  ;;  %v485_v36 = vadd.f32 %v550_v4, %v484_v35 }
 0x2ae   :  { %v831_v37 = vpop.eup %830  ;;  %524 = vst.msk [vmem:[%s1102_s7] sm:$0xff] %vm523_vm1, %v513_v33  ;;  %v502_v38 = vmul.f32 0.5, %v490_v34 }
 0x2af   :  { %v833_v39 = vpop.eup %832  ;;  %v516_v40 = vmul.f32 0.5, %v831_v37  ;;  %v501_v41 = vmul.f32 0.5, %v485_v36 }
 0x2b0   :  { %v515_v42 = vmul.f32 0.5, %v833_v39  ;;  %842 = vtanh.f32 %v502_v38 }
 0x2b1   :  { %527 = vst.msk [vmem:[%s1102_s7 + $0x18] sm:$0xff] %vm523_vm1, %v516_v40  ;;  %844 = vtanh.f32 %v501_v41 }
 0x2b2   :  { %v835_v43 = vpop.eup %834  ;;  %526 = vst.msk [vmem:[%s1102_s7 + $0x10] sm:$0xff] %vm523_vm1, %v515_v42 }
 0x2b3   :  { %v837_v44 = vpop.eup %836  ;;  %v518_v45 = vmul.f32 0.5, %v835_v43 }
 0x2b4   :  { %v517_v46 = vmul.f32 0.5, %v837_v44 }
 0x2b5   :  { %529 = vst.msk [vmem:[%s1102_s7 + $0x28] sm:$0xff] %vm523_vm1, %v518_v45 }
 0x2b6   :  { %v839_v47 = vpop.eup %838  ;;  %528 = vst.msk [vmem:[%s1102_s7 + $0x20] sm:$0xff] %vm523_vm1, %v517_v46 }
 0x2b7   :  { %v841_v48 = vpop.eup %840  ;;  %v520_v49 = vmul.f32 0.5, %v839_v47 }
 0x2b8   :  { %v519_v50 = vmul.f32 0.5, %v841_v48 }
 0x2b9   :  { %531 = vst.msk [vmem:[%s1102_s7 + $0x38] sm:$0xff] %vm523_vm1, %v520_v49 }
 0x2ba   :  { %v843_v51 = vpop.eup %842  ;;  %530 = vst.msk [vmem:[%s1102_s7 + $0x30] sm:$0xff] %vm523_vm1, %v519_v50 }
 0x2bb   :  { %v845_v52 = vpop.eup %844  ;;  %v522_v53 = vmul.f32 0.5, %v843_v51 }
 0x2bc   :  { %v521_v54 = vmul.f32 0.5, %v845_v52 }
 0x2bd   :  { %533 = vst.msk [vmem:[%s1102_s7 + $0x48] sm:$0xff] %vm523_vm1, %v522_v53 }
 0x2be   :  { %532 = vst.msk [vmem:[%s1102_s7 + $0x40] sm:$0xff] %vm523_vm1, %v521_v54 }

</bundles_post_ra>
